<compile_context>
chip_gen: v7x
topology: tpu7x:2x2x1
jax: 0.10.0
libtpu: 0.0.40
codegen_flags: <defaults>
</compile_context>

<pallas_src>
import functools

import jax
import jax.numpy as jnp
from jax.experimental import pallas as pl
from jax.experimental.pallas import tpu as pltpu


# ----------------------------------------------------------------------------
# Small host-side helpers
# ----------------------------------------------------------------------------
def _cdiv(a, b):
    return (a + b - 1) // b


def _round_up(a, b):
    return _cdiv(a, b) * b


def _sublane_multiple(dtype):
    # Packing-aware sublane multiple: f32 -> 8, bf16/f16 -> 16, int8/fp8 -> 32.
    itemsize = jnp.dtype(dtype).itemsize
    return {4: 8, 2: 16, 1: 32}.get(itemsize, 8)


def _vmem_capacity_bytes():
    try:
        return int(pltpu.get_tpu_info().vmem_capacity_bytes)
    except Exception:
        return 128 << 20  # v5e/v6e default if the query is unavailable


def _num_tensorcores():
    # Best-effort detection of multi-TensorCore chips (v7x, and megacore
    # v4/v5p).  Falling back to 1 only loses a perf tweak, never correctness.
    try:
        kind = jax.devices()[0].device_kind.lower()
    except Exception:
        return 1
    if "7" in kind or "v4" in kind or "v5p" in kind:
        return 2
    return 1


def _choose_channel_tile(B, C, HW, itemsize, sub, budget, target_steps):
    """Channel tile: multiple of the dtype sublane packing (or == C), sized so
    the double-buffered in + 5x-out footprint stays near `budget`*12, and small
    enough that multi-core chips get at least `target_steps` grid steps."""
    bytes_per_ch = HW * itemsize
    budget_tc = max(sub, (budget // bytes_per_ch) // sub * sub)
    # If the whole channel extent fits the budget, a full-extent block is best
    # (exact, no ragged block, legal regardless of divisibility-by-8).
    tc = C if C <= budget_tc else budget_tc
    # Multi-TensorCore grid shaping: make sure there are enough grid steps to
    # share across cores (and keep them roughly balanced).
    if B * _cdiv(C, tc) < target_steps:
        blocks_needed = _cdiv(target_steps, B)
        tc_bal = max(sub, _round_up(_cdiv(C, blocks_needed), sub))
        if tc_bal < C:
            tc = min(tc, tc_bal)
    return tc


# ----------------------------------------------------------------------------
# Kernel
# ----------------------------------------------------------------------------
def _patch_shift_kernel(x_ref, m_ref, out_ref, *, shifts):
    # x_ref:   (TC, H*W)      input channel tile, spatial dims flattened
    # m_ref:   (4, H*W)       border-validity masks in x.dtype (lu, ru, lb, rb)
    # out_ref: (5, TC, H*W)   [x, x_lu, x_ru, x_lb, x_rb]
    x = x_ref[...]
    m = m_ref[...]
    zero = jnp.zeros((), dtype=x.dtype)

    out_ref[0] = x
    for k in range(4):  # unrolled at trace time
        # Rotate along the flattened lane axis (XLU); the wrapped-around values
        # land exactly on the border region, which the mask select zeroes out.
        rolled = x if shifts[k] == 0 else pltpu.roll(x, shifts[k], axis=1)
        out_ref[k + 1] = jnp.where(m[k] != zero, rolled, zero)


# ----------------------------------------------------------------------------
# Pure-JAX reference / fallback path
# ----------------------------------------------------------------------------
def _patch_shift_jax(x, patch_size):
    """Pure-JAX mirror of the PyTorch forward (is_pe=True)."""
    s = int(patch_size * (1 / 2))
    xp = jnp.pad(x, ((0, 0), (0, 0), (s, s), (s, s)))
    x_lu = xp[:, :, :-2 * s, :-2 * s]
    x_ru = xp[:, :, :-2 * s, 2 * s:]
    x_lb = xp[:, :, 2 * s:, :-2 * s]
    x_rb = xp[:, :, 2 * s:, 2 * s:]
    return jnp.concatenate([x, x_lu, x_ru, x_lb, x_rb], axis=1)


# ----------------------------------------------------------------------------
# Wrapper
# ----------------------------------------------------------------------------
def patch_shifting(x, patch_size, is_pe=True):
    """Pallas implementation of PatchShifting.forward (is_pe=True)."""
    if not is_pe:
        # TODO(synk): the is_pe=False branch assigns (H, W) crops into
        # (H+2s, W+2s) slices in-place, a shape mismatch that errors in the
        # reference PyTorch module; there is no well-defined semantics to port.
        raise NotImplementedError("is_pe=False branch is ill-defined in the reference module")

    s = int(patch_size * (1 / 2))
    if s < 1:
        raise ValueError("patch_size must be >= 2 (shift >= 1)")

    B, C, H, W = x.shape
    HW = H * W

    # Tiny / lane-unfriendly spatial maps (e.g. 7x7, 14x14): stores would be
    # narrow masked vst.msk and DMA runs short, so XLA fusion matches the
    # kernel — let it handle them.
    if HW % 128 != 0 and HW < 1024:
        return _patch_shift_jax(x, patch_size)

    itemsize = jnp.dtype(x.dtype).itemsize
    sub = _sublane_multiple(x.dtype)
    vmem_cap = _vmem_capacity_bytes()
    # ~2 MiB input block: double-buffered in + 5x out footprint is ~12x that,
    # which fits every generation's scoped VMEM with headroom.
    budget = min(2 << 20, max(1 << 20, vmem_cap // 32))
    n_cores = _num_tensorcores()
    target_steps = max(2, 2 * n_cores)

    TC = _choose_channel_tile(B, C, HW, itemsize, sub, budget, target_steps)
    num_c_blocks = _cdiv(C, TC)  # ragged last block handled by Pallas masking

    # Flatten spatial dims: lane-dense blocks; every diagonal shift becomes a
    # single 1-D rotate along the flattened last axis.
    x2 = x.reshape(B, C, HW)

    # Rotate amounts (np.roll convention: positive moves data to higher index).
    #   x_lu[h, w] = x[h-s, w-s]  -> roll +s*(W+1)
    #   x_ru[h, w] = x[h-s, w+s]  -> roll +s*(W-1)
    #   x_lb[h, w] = x[h+s, w-s]  -> roll -s*(W-1)
    #   x_rb[h, w] = x[h+s, w+s]  -> roll -s*(W+1)
    shifts = (
        (s * (W + 1)) % HW,
        (s * (W - 1)) % HW,
        (-s * (W - 1)) % HW,
        (-s * (W + 1)) % HW,
    )

    # Border masks (positions whose padded-source value is real data, not the
    # zero pad), precomputed outside the kernel so no vector int div/mod is
    # needed in-kernel.  Cast to x.dtype so the mask shares the data's sublane
    # packing (no i32<->bf16 pack/unpack on the VPU).  Block index is constant,
    # so it is fetched once and reused across all grid steps.
    idx = jnp.arange(HW, dtype=jnp.int32)
    row = idx // W
    col = idx % W
    top, bot = row >= s, row < H - s
    left, right = col >= s, col < W - s
    masks = jnp.stack(
        [top & left, top & right, bot & left, bot & right]
    ).astype(x.dtype)                                        # (4, HW)

    kernel = functools.partial(_patch_shift_kernel, shifts=shifts)

    # VMEM: double-buffered input block + 5x output block, plus the mask block
    # (conservatively counted as double-buffered), plus headroom for Mosaic
    # internal scratch.  Cap at ~48 MiB on 64-MiB-VMEM chips (v7x), <=64 MiB
    # elsewhere (128 MiB physical).
    in_block = TC * HW * itemsize
    mask_bytes = 4 * HW * itemsize
    vmem_need = 2 * 6 * in_block + 2 * mask_bytes
    vmem_ceiling = min(64 << 20, (3 * vmem_cap) // 4)
    vmem_limit = int(max(8 << 20, min(vmem_ceiling, vmem_need + (4 << 20))))

    out5 = pl.pallas_call(
        kernel,
        out_shape=jax.ShapeDtypeStruct((B, 5, C, HW), x.dtype),
        grid_spec=pltpu.PrefetchScalarGridSpec(
            num_scalar_prefetch=0,
            grid=(B, num_c_blocks),
            in_specs=[
                pl.BlockSpec((None, TC, HW), lambda b, c: (b, c, 0)),
                pl.BlockSpec((4, HW), lambda b, c: (0, 0)),
            ],
            out_specs=pl.BlockSpec((None, 5, TC, HW), lambda b, c: (b, 0, c, 0)),
        ),
        compiler_params=pltpu.CompilerParams(
            dimension_semantics=("parallel", "parallel"),
            vmem_limit_bytes=vmem_limit,
        ),
        cost_estimate=pl.CostEstimate(
            flops=0,
            transcendentals=0,
            bytes_accessed=6 * B * C * HW * itemsize + mask_bytes,
        ),
    )(x2, masks)

    # (B, 5, C, H*W) -> (B, 5*C, H, W): contiguous reshape == torch.cat(dim=1).
    return out5.reshape(B, 5 * C, H, W)


if __name__ == "__main__":
    key = jax.random.PRNGKey(0)
    B, C, H, W = 2, 4, 16, 16
    patch_size = 4  # -> shift = 2

    x = jax.random.normal(key, (B, C, H, W), dtype=jnp.float32)

    out = patch_shifting(x, patch_size, is_pe=True)
    out = jax.block_until_ready(out)

    ref = _patch_shift_jax(x, patch_size)
    assert out.shape == (B, 5 * C, H, W), out.shape
    assert bool(jnp.array_equal(out, ref)), "Pallas output does not match reference"
    print("KERNEL_OK")
</pallas_src>

<mosaic_0001>
module attributes {stable_mosaic.version = 11 : i64} {
  func.func @_patch_shift_kernel(%arg0: i32, %arg1: i32, %arg2: memref<1x4x256xf32, #tpu.memory_space<vmem>>, %arg3: memref<4x256xf32, #tpu.memory_space<vmem>>, %arg4: memref<1x5x4x256xf32, #tpu.memory_space<vmem>>) attributes {dimension_semantics = [#tpu.dimension_semantics<parallel>, #tpu.dimension_semantics<parallel>], iteration_bounds = array<i64: 2, 1>, scalar_prefetch = 0 : i64, scratch_operands = 0 : i64, tpu.core_type = #tpu.core_type<tc>, window_params = [{transform_indices = @transform_0, window_bounds = array<i64: 1, 4, 256>}, {pipeline_mode = #tpu.pipeline_mode<synchronous>, transform_indices = @transform_1, window_bounds = array<i64: 4, 256>}, {transform_indices = @transform_2, window_bounds = array<i64: 1, 5, 4, 256>}]} {
    %c0 = arith.constant 0 : index
    %c0_0 = arith.constant 0 : index
    %c0_1 = arith.constant 0 : index
    %0 = vector.load %arg2[%c0, %c0_0, %c0_1] : memref<1x4x256xf32, #tpu.memory_space<vmem>>, vector<1x4x256xf32>
    %1 = vector.shape_cast %0 : vector<1x4x256xf32> to vector<4x256xf32>
    %c0_2 = arith.constant 0 : index
    %c0_3 = arith.constant 0 : index
    %2 = vector.load %arg3[%c0_2, %c0_3] : memref<4x256xf32, #tpu.memory_space<vmem>>, vector<4x256xf32>
    %c0_4 = arith.constant 0 : index
    %c0_5 = arith.constant 0 : index
    %c0_6 = arith.constant 0 : index
    %c0_7 = arith.constant 0 : index
    %3 = vector.load %arg4[%c0_4, %c0_5, %c0_6, %c0_7] : memref<1x5x4x256xf32, #tpu.memory_space<vmem>>, vector<1x1x4x256xf32>
    %4 = vector.shape_cast %3 : vector<1x1x4x256xf32> to vector<4x256xf32>
    %5 = vector.shape_cast %1 : vector<4x256xf32> to vector<1x1x4x256xf32>
    tpu.vector_store %arg4[%c0_4, %c0_5, %c0_6, %c0_7], %5 {strides = array<i32>} : memref<1x5x4x256xf32, #tpu.memory_space<vmem>>, vector<1x1x4x256xf32>,
    %c34_i32 = arith.constant 34 : i32
    %6 = tpu.dynamic_rotate %1 by %c34_i32 dim 1 : vector<4x256xf32>, i32 -> vector<4x256xf32>
    %7 = vector.extract_strided_slice %2 {offsets = [0, 0], sizes = [1, 256], strides = [1, 1]} : vector<4x256xf32> to vector<1x256xf32>
    %8 = vector.shape_cast %7 : vector<1x256xf32> to vector<256xf32>
    %cst = arith.constant 0.000000e+00 : f32
    %9 = vector.broadcast %cst : f32 to vector<256xf32>
    %10 = arith.cmpf one, %8, %9 : vector<256xf32>
    %cst_8 = arith.constant 0.000000e+00 : f32
    %11 = vector.shape_cast %10 : vector<256xi1> to vector<1x256xi1>
    %12 = vector.broadcast %11 : vector<1x256xi1> to vector<4x256xi1>
    %13 = vector.broadcast %cst_8 : f32 to vector<4x256xf32>
    %14 = arith.select %12, %6, %13 : vector<4x256xi1>, vector<4x256xf32>
    %c0_9 = arith.constant 0 : index
    %c1 = arith.constant 1 : index
    %c0_10 = arith.constant 0 : index
    %c0_11 = arith.constant 0 : index
    %15 = vector.load %arg4[%c0_9, %c1, %c0_10, %c0_11] : memref<1x5x4x256xf32, #tpu.memory_space<vmem>>, vector<1x1x4x256xf32>
    %16 = vector.shape_cast %15 : vector<1x1x4x256xf32> to vector<4x256xf32>
    %17 = vector.shape_cast %14 : vector<4x256xf32> to vector<1x1x4x256xf32>
    tpu.vector_store %arg4[%c0_9, %c1, %c0_10, %c0_11], %17 {strides = array<i32>} : memref<1x5x4x256xf32, #tpu.memory_space<vmem>>, vector<1x1x4x256xf32>,
    %c30_i32 = arith.constant 30 : i32
    %18 = tpu.dynamic_rotate %1 by %c30_i32 dim 1 : vector<4x256xf32>, i32 -> vector<4x256xf32>
    %19 = vector.extract_strided_slice %2 {offsets = [1, 0], sizes = [1, 256], strides = [1, 1]} : vector<4x256xf32> to vector<1x256xf32>
    %20 = vector.shape_cast %19 : vector<1x256xf32> to vector<256xf32>
    %cst_12 = arith.constant 0.000000e+00 : f32
    %21 = vector.broadcast %cst_12 : f32 to vector<256xf32>
    %22 = arith.cmpf one, %20, %21 : vector<256xf32>
    %cst_13 = arith.constant 0.000000e+00 : f32
    %23 = vector.shape_cast %22 : vector<256xi1> to vector<1x256xi1>
    %24 = vector.broadcast %23 : vector<1x256xi1> to vector<4x256xi1>
    %25 = vector.broadcast %cst_13 : f32 to vector<4x256xf32>
    %26 = arith.select %24, %18, %25 : vector<4x256xi1>, vector<4x256xf32>
    %c0_14 = arith.constant 0 : index
    %c2 = arith.constant 2 : index
    %c0_15 = arith.constant 0 : index
    %c0_16 = arith.constant 0 : index
    %27 = vector.load %arg4[%c0_14, %c2, %c0_15, %c0_16] : memref<1x5x4x256xf32, #tpu.memory_space<vmem>>, vector<1x1x4x256xf32>
    %28 = vector.shape_cast %27 : vector<1x1x4x256xf32> to vector<4x256xf32>
    %29 = vector.shape_cast %26 : vector<4x256xf32> to vector<1x1x4x256xf32>
    tpu.vector_store %arg4[%c0_14, %c2, %c0_15, %c0_16], %29 {strides = array<i32>} : memref<1x5x4x256xf32, #tpu.memory_space<vmem>>, vector<1x1x4x256xf32>,
    %c226_i32 = arith.constant 226 : i32
    %30 = tpu.dynamic_rotate %1 by %c226_i32 dim 1 : vector<4x256xf32>, i32 -> vector<4x256xf32>
    %31 = vector.extract_strided_slice %2 {offsets = [2, 0], sizes = [1, 256], strides = [1, 1]} : vector<4x256xf32> to vector<1x256xf32>
    %32 = vector.shape_cast %31 : vector<1x256xf32> to vector<256xf32>
    %cst_17 = arith.constant 0.000000e+00 : f32
    %33 = vector.broadcast %cst_17 : f32 to vector<256xf32>
    %34 = arith.cmpf one, %32, %33 : vector<256xf32>
    %cst_18 = arith.constant 0.000000e+00 : f32
    %35 = vector.shape_cast %34 : vector<256xi1> to vector<1x256xi1>
    %36 = vector.broadcast %35 : vector<1x256xi1> to vector<4x256xi1>
    %37 = vector.broadcast %cst_18 : f32 to vector<4x256xf32>
    %38 = arith.select %36, %30, %37 : vector<4x256xi1>, vector<4x256xf32>
    %c0_19 = arith.constant 0 : index
    %c3 = arith.constant 3 : index
    %c0_20 = arith.constant 0 : index
    %c0_21 = arith.constant 0 : index
    %39 = vector.load %arg4[%c0_19, %c3, %c0_20, %c0_21] : memref<1x5x4x256xf32, #tpu.memory_space<vmem>>, vector<1x1x4x256xf32>
    %40 = vector.shape_cast %39 : vector<1x1x4x256xf32> to vector<4x256xf32>
    %41 = vector.shape_cast %38 : vector<4x256xf32> to vector<1x1x4x256xf32>
    tpu.vector_store %arg4[%c0_19, %c3, %c0_20, %c0_21], %41 {strides = array<i32>} : memref<1x5x4x256xf32, #tpu.memory_space<vmem>>, vector<1x1x4x256xf32>,
    %c222_i32 = arith.constant 222 : i32
    %42 = tpu.dynamic_rotate %1 by %c222_i32 dim 1 : vector<4x256xf32>, i32 -> vector<4x256xf32>
    %43 = vector.extract_strided_slice %2 {offsets = [3, 0], sizes = [1, 256], strides = [1, 1]} : vector<4x256xf32> to vector<1x256xf32>
    %44 = vector.shape_cast %43 : vector<1x256xf32> to vector<256xf32>
    %cst_22 = arith.constant 0.000000e+00 : f32
    %45 = vector.broadcast %cst_22 : f32 to vector<256xf32>
    %46 = arith.cmpf one, %44, %45 : vector<256xf32>
    %cst_23 = arith.constant 0.000000e+00 : f32
    %47 = vector.shape_cast %46 : vector<256xi1> to vector<1x256xi1>
    %48 = vector.broadcast %47 : vector<1x256xi1> to vector<4x256xi1>
    %49 = vector.broadcast %cst_23 : f32 to vector<4x256xf32>
    %50 = arith.select %48, %42, %49 : vector<4x256xi1>, vector<4x256xf32>
    %c0_24 = arith.constant 0 : index
    %c4 = arith.constant 4 : index
    %c0_25 = arith.constant 0 : index
    %c0_26 = arith.constant 0 : index
    %51 = vector.load %arg4[%c0_24, %c4, %c0_25, %c0_26] : memref<1x5x4x256xf32, #tpu.memory_space<vmem>>, vector<1x1x4x256xf32>
    %52 = vector.shape_cast %51 : vector<1x1x4x256xf32> to vector<4x256xf32>
    %53 = vector.shape_cast %50 : vector<4x256xf32> to vector<1x1x4x256xf32>
    tpu.vector_store %arg4[%c0_24, %c4, %c0_25, %c0_26], %53 {strides = array<i32>} : memref<1x5x4x256xf32, #tpu.memory_space<vmem>>, vector<1x1x4x256xf32>,
    return
  }
  func.func @transform_0(%arg0: i32, %arg1: i32) -> (i32, i32, i32) {
    %c0_i32 = arith.constant 0 : i32
    %c0_i32_0 = arith.constant 0 : i32
    return %arg0, %arg1, %c0_i32 : i32, i32, i32
  }
  func.func @transform_1(%arg0: i32, %arg1: i32) -> (i32, i32) {
    %c0_i32 = arith.constant 0 : i32
    %c0_i32_0 = arith.constant 0 : i32
    %c0_i32_1 = arith.constant 0 : i32
    return %c0_i32, %c0_i32_0 : i32, i32
  }
  func.func @transform_2(%arg0: i32, %arg1: i32) -> (i32, i32, i32, i32) {
    %c0_i32 = arith.constant 0 : i32
    %c0_i32_0 = arith.constant 0 : i32
    %c0_i32_1 = arith.constant 0 : i32
    return %arg0, %c0_i32, %arg1, %c0_i32_0 : i32, i32, i32, i32
  }
}

</mosaic_0001>

<bundles_post_ra>
// kernel: tpu_custom_call.1
= control target key start
LH: loop header
LB: loop body
LE: loop exit
PB: predicated region body
PF: predicated region fallthrough
CT: control target
= control target key end

     0   :  { %7 = vsyncpa [#allocation3], 0  ;;  %s1036_s0 = inlined_call_operand.hbm [shape: f32[2,4,256], index: 0, kind: input, shape index: {}]   ;;  %s1037_s1 = inlined_call_operand.hbm [shape: f32[4,256], index: 1, kind: input, shape index: {}]   ;;  %s1038_s2 = inlined_call_operand.hbm [shape: f32[2,5,4,256], index: 2, kind: output, shape index: {}]  }
   0x1   :  { %9 = vsyncpa [#allocation3 + $0x1], 0 }
   0x2   :  { %10 = vsyncpa [#allocation6], 0 }
   0x3   :  { %11 = vsyncpa [#allocation4], 0 }
   0x4   :  { %13 = vsyncpa [#allocation4 + $0x1], 0  ;;  %s740_s9 = smov 0   ;;  %s742_s10 = smov 0  }
   0x5   :  { %s744_s11 = smov 0   ;;  %s746_s12 = smov 0  }
   0x6   :  { %s748_s13 = smov 0   ;;  %s750_s14 = smov 0  }
   0x7 LB: > { %s469_s15 = sadd.s32 4294967295, %s714_s14   ;;  %s470_s16 = sadd.s32 4294967294, %s714_s14   ;;  %s714_s14 = sphi %s750_s14, %s19_s14   ;;  %s710_s13 = sphi %s748_s13, %s1063_s13   ;;  %s706_s12 = sphi %s746_s12, %s1062_s12   ;;  %s702_s11 = sphi %s744_s11, %s1061_s11   ;;  %s698_s10 = sphi %s742_s10, %s1060_s10   ;;  %s694_s9 = sphi %s740_s9, %s1059_s9  }
   0x8   : > { %p53_p0 = scmp.ne.s32.totalorder %s698_s10, %s694_s9  ;;  %p774_p1 = scmp.eq.s32.totalorder %s469_s15, 0 }
   0x9   : > { %p778_p2 = scmp.eq.s32.totalorder %s469_s15, 1  ;;  %p106_p3 = scmp.eq.s32.totalorder %s470_s16, 1 }
   0xa   : > { %s1043_s17 = scalar_select %p774_p1, 1, 0 }
   0xb   : > { %s1044_s18 = scalar_select %p778_p2, 1, 0 }
   0xc   : > { %p784_p4 = por %p774_p1, %p53_p0  ;;  %p471_p5 = scmp.ge.s32.totalorder %s714_s14, 1 }
   0xd   : > { %p789_p6 = por %p106_p3, %p53_p0  ;;  %p113_p7 = scmp.lt.s32.totalorder %s714_s14, 3 }
   0xe   : > { %s1045_s19 = scalar_select %p784_p4, 1, 0 }
   0xf   : > { %s1046_s20 = scalar_select %p789_p6, 1, 0 }
  0x10   : > { %p794_p8 = pnand %p471_p5, %p113_p7  ;;  %s716_s22 = smov [#allocation5]  }
  0x11   : > { %s126_s23 = sshll.u32 %s716_s22, 4  ;;  %s31_s25 = sadd.s32 1, %s710_s13  ;;  %s127_s23 = int_to_ptr.vmem [resolvable:$true] %s126_s23 }
  0x12   : > { %s1047_s21 = scalar_select %p794_p8, 1, 0 }
  0x13   : > { %p498_p10 = pneg %p794_p8  ;;  %s40_s26 = sadd.s32 1, %s702_s11 }
  0x14   : > { %p809_p12 = scmp.ge.s32.totalorder %s31_s25, 2  ;;  %s570_s30 = scalar_lea.hbm %s1037_s1, 128 }
  0x15   : > { %p803_p11 = pnand %p498_p10, %p774_p1  ;;  %p571_p13 = scmp.ne.s32.totalorder %s1037_s1, %s570_s30 }
  0x16   : > { %s1049_s27 = scalar_select %p809_p12, 1, 0 }
  0x17   : > { %p572_p0 = pneg %p803_p11  ;;  %p577_p7 = scmp.lt.u32.totalorder %s570_s30, %s1037_s1 }
  0x19   : > { %p573_p3 = pnand %p572_p0, %p571_p13 }
  0x1b   : > { %p574_p5 = pneg %p573_p3 }
  0x1d   : > { %p579_p10 = pnand %p577_p7, %p574_p5 }
  0x1f   : > { %582 = shalt.err (!%p579_p10)
}
  0x20   : > { %s583_s7 = scalar_lea.vmem %s127_s23, 128  ;;  %p591_p4 = scmp.lt.s32.totalorder %s127_s23, %s127_s23 }
  0x21   : > { %p584_p9 = scmp.ne.s32.totalorder %s127_s23, %s583_s7  ;;  %p592_p8 = scmp.lt.s32.totalorder %s583_s7, %s583_s7 }
  0x23   : > { %p586_p6 = pnand %p584_p9, %p572_p0  ;;  %p593_p2 = por %p592_p8, %p591_p4 }
  0x25   : > { %p587_p1 = pneg %p586_p6 }
  0x27   : > { %p594_p12 = pnand %p593_p2, %p587_p1 }
  0x29   : > { %597 = shalt.err (!%p594_p12)
}
  0x2a   : > { %501 = dma.hbm_to_vmem [thread:$0]  (!%p803_p11), %s1037_s1, 128, %s127_s23, [#allocation6]  }
  0x2b   : > { %p1050_p4 = scmp.ne.s32.totalorder %s1049_s27, 0  ;;  %p47_p1 = scmp.ne.s32.totalorder %s702_s11, %s698_s10 }
  0x2c   : > { %p48_p2 = scmp.eq.s32.totalorder %s714_s14, 0  ;;  %p511_p6 = scmp.lt.s32.totalorder %s714_s14, 2 }
  0x2d   : > { %s1065_s25 = smov (%p1050_p4, %s31_s25), 0  ;;  %p1051_p12 = scmp.ne.s32.totalorder %s1044_s18, 0 }
  0x2e   : > { %s35_s16 = ssub.s32 %s710_s13, %s1065_s25  ;;  %p49_p9 = por %p48_p2, %p47_p1 }
  0x2f   : > { %p38_p8 = scmp.eq.s32.totalorder %s35_s16, 0  ;;  %p841_p13 = por %p1051_p12, %p47_p1 }
  0x30   : > { %s137_s24 = sand.u32 1, %s702_s11   ;;  %s487_s27 = sshll.u32 %s710_s13, 7 }
  0x31   : > { %s849_s28 = scalar_select %p38_p8, %s702_s11, %s40_s26  }
  0x32   : > { %s474_s23 = sshll.u32 %s137_s24, 3  ;;  %s855_s3 = scalar_lea.hbm %s1036_s0, %s487_s27 }
  0x33   : > { %s141_s18 = scalar_lea.vmem [#allocation2], %s474_s23  ;;  %p859_p11 = pnand %p511_p6, %p49_p9 }
  0x34   : > { %s151_s4 = sshll.u32 %s141_s18, 4  ;;  %s138_s26 = scalar_lea.sflag [#allocation3], %s137_s24  ;;  %s857_s4 = int_to_ptr.vmem [resolvable:$true] %s151_s4 }
  0x35   : > { %s598_s6 = scalar_lea.hbm %s855_s3, 128  ;;  %p600_p3 = pneg %p859_p11 }
  0x36   : > { %p599_p0 = scmp.ne.s32.totalorder %s855_s3, %s598_s6  ;;  %s603_s15 = scalar_lea.hbm %s1036_s0, 256 }
  0x37   : > { %p604_p10 = scmp.lt.u32.totalorder %s855_s3, %s1036_s0  ;;  %p605_p4 = scmp.lt.u32.totalorder %s603_s15, %s598_s6 }
  0x38   : > { %p601_p5 = pnand %p600_p3, %p599_p0  ;;  %p607_p2 = scmp.lt.u32.totalorder %s598_s6, %s855_s3 }
  0x39   : > { %p606_p1 = por %p605_p4, %p604_p10 }
  0x3a   : > { %p602_p7 = pneg %p601_p5 }
  0x3b   : > { %p608_p6 = por %p607_p2, %p606_p1 }
  0x3d   : > { %p609_p8 = pnand %p608_p6, %p602_p7 }
  0x3f   : > { %612 = shalt.err (!%p609_p8)
}
  0x40   : > { %s613_s24 = scalar_lea.vmem %s857_s4, 128  ;;  %s717_s27 = smov [#allocation2]  }
  0x41   : > { %p614_p9 = scmp.ne.s32.totalorder %s857_s4, %s613_s24  ;;  %s618_s29 = sshll.u32 %s717_s27, 4  ;;  %s619_s29 = int_to_ptr.vmem [resolvable:$false] %s618_s29 }
  0x42   : > { %s620_s30 = scalar_lea.vmem %s619_s29, 256  ;;  %p621_p5 = scmp.lt.s32.totalorder %s857_s4, %s619_s29 }
  0x43   : > { %p616_p12 = pnand %p614_p9, %p600_p3  ;;  %p622_p10 = scmp.lt.s32.totalorder %s620_s30, %s613_s24 }
  0x45   : > { %p617_p0 = pneg %p616_p12  ;;  %p623_p4 = por %p622_p10, %p621_p5 }
  0x47   : > { %p624_p1 = pnand %p623_p4, %p617_p0 }
  0x49   : > { %627 = shalt.err (!%p624_p1)
}
  0x4a   : > { %505 = dma.hbm_to_vmem [thread:$0]  (!%p859_p11), %s855_s3, 128, %s857_s4, %s138_s26  }
  0x4b   : > { %p1054_p7 = scmp.ne.s32.totalorder %s1047_s21, 0 }
  0x4c   : > { %s891_s18 = sand.u32 (!%p1054_p7), 1, %s698_s10   ;;  %p1055_p3 = scmp.ne.s32.totalorder (!%p1054_p7), %s1045_s19, 0 }
  0x4d   : > { %160 = sbr.rel (%p1054_p7) target bundleno = 251 (0xfb), region = 28  ;;  %s478_s6 = sshll.u32 (!%p1054_p7), %s891_s18, 3 }
  0x4e   : > { %s163_s7 = scalar_lea.sflag (!%p1054_p7), [#allocation3], %s891_s18  ;;  %s166_s8 = scalar_lea.vmem (!%p1054_p7), [#allocation2], %s478_s6 }
  0x54   : > { %681 = dma.done.wait (%p1055_p3), %s163_s7, 128  }
  0x55   : > { %683 = vsyncadd (%p1055_p3), %s163_s7, 4294967168  ;;  %p1056_p2 = scmp.ne.s32.totalorder %s1043_s17, 0 }
  0x57   : > { %685 = dma.done.wait (%p1056_p2), [#allocation6], 128  }
  0x58   : > { %687 = vsyncadd (%p1056_p2), [#allocation6], 4294967168  ;;  %s488_s21 = smul.u32 40, %s891_s18  ;;  %v191_v0 = vld [vmem:[%s166_s8] sm:$0xff]  ;;  %s718_s3 = smov 30   ;;  %v201_v2 = vlaneseq  ;;  %v910_v7 = vld [vmem:[#allocation5] sm:$0xff] }
  0x59   : > { %245 = vrot.lane.b32.xlu1 %v191_v0, %s718_s3  ;;  %s719_s5 = smov 34   ;;  %v195_v1 = vcombine.high %v191_v0, %v191_v0  ;;  %s720_s19 = smov 98   ;;  %vm228_vm1 = vcmask 1041409   ;;  %vm230_vm2 = vcmask 1045509   ;;  %vm233_vm3 = vcmask 1042434  }
  0x5a   : > { %s904_s4 = scalar_lea.vmem [#allocation7], %s488_s21  ;;  %197 = vrot.lane.b32.xlu0 %v191_v0, %s719_s5  ;;  %s721_s26 = smov 94   ;;  %v907_v3 = vand.u32 127, %v201_v2  ;;  %vm206_vm6 = vcmp.ne.f32.partialorder %v910_v7, 0.0  ;;  %vm235_vm7 = vcmask 1046534   ;;  %vm238_vm8 = vcmask 1043459  }
  0x5b   : > { %193 = vst [vmem:[%s904_s4] sm:$0xff] %v191_v0  ;;  %vm240_vm10 = vcmask 1047559   ;;  %s489_s17 = smul.u32 640, %s706_s12  ;;  %s372_s15 = sshll.u32 %s904_s4, 4  ;;  %s984_s15 = int_to_ptr.vmem [resolvable:$true] %s372_s15 }
  0x5c   : > { %vm249_vm0 = vcmp.lt.s32.totalorder %v907_v3, 30  ;;  %vm286_vm4 = vcmp.lt.s32.totalorder %v907_v3, 98  ;;  %vm203_vm5 = vcmp.lt.s32.totalorder %v907_v3, 34  ;;  %vm323_vm9 = vcmp.lt.s32.totalorder %v907_v3, 94  ;;  %s357_s12 = scalar_lea.sflag [#allocation4], %s891_s18  ;;  %s628_s27 = scalar_lea.vmem %s984_s15, 640 }
  0x5d   : > { %247 = vrot.lane.b32.xlu1 %v195_v1, %s718_s3  ;;  %s982_s24 = scalar_lea.hbm %s1038_s2, %s489_s17  ;;  %p629_p11 = scmp.ne.s32.totalorder %s984_s15, %s628_s27 }
  0x5e   : > { %282 = vrot.lane.b32.xlu0 %v191_v0, %s720_s19  ;;  %s722_s29 = smov [#allocation7]  }
  0x5f   : > { %p630_p6 = pnand %p629_p11, %p841_p13  ;;  %s632_s30 = sshll.u32 %s722_s29, 4  ;;  %s633_s30 = int_to_ptr.vmem [resolvable:$false] %s632_s30 }
  0x60   : > { %s634_s6 = scalar_lea.vmem %s633_s30, 1280  ;;  %p635_p9 = scmp.lt.s32.totalorder %s984_s15, %s633_s30 }
  0x61   : > { %284 = vrot.lane.b32.xlu1 %v195_v1, %s720_s19  ;;  %p631_p8 = pneg %p630_p6  ;;  %p636_p12 = scmp.lt.s32.totalorder %s634_s6, %s628_s27 }
  0x62   : > { %199 = vrot.lane.b32.xlu0 %v195_v1, %s719_s5 }
  0x63   : > { %p637_p0 = por %p636_p12, %p635_p9 }
  0x65   : > { %321 = vrot.lane.b32.xlu1 %v195_v1, %s721_s26  ;;  %p638_p5 = pnand %p637_p0, %p631_p8 }
  0x66   : > { %319 = vrot.lane.b32.xlu0 %v191_v0, %s721_s26 }
  0xcb   : > { %v246_v4 = vpop.permute.xlu1 %245 }
  0xcc   : > { %v198_v5 = vpop.permute.xlu0 %197 }
  0xcf   : > { %v248_v8 = vpop.permute.xlu1 %247 }
  0xd0   : > { %v283_v6 = vpop.permute.xlu0 %282  ;;  %v250_v9 = vsel %vm249_vm0, %v246_v4, %v248_v8  ;;  %v251_v10 = vsel %vm249_vm0, %v248_v8, %v246_v4 }
  0xd1   : > { %v254_v11 = vcombine.low %v251_v10, %v250_v9 }
  0xd3   : > { %v255_v12 = vrot.slane %v254_v11, 7  ;;  %v256_v13 = vrot.slane %v254_v11, 1  ;;  %v257_v14 = vrot.slane %v254_v11, 2  ;;  %v285_v15 = vpop.permute.xlu1 %284  ;;  %v263_v25 = vsel %vm206_vm6, %v254_v11, 0.0 }
  0xd4   : > { %v200_v16 = vpop.permute.xlu0 %199  ;;  %v287_v17 = vsel %vm286_vm4, %v283_v6, %v285_v15  ;;  %v288_v18 = vsel %vm286_vm4, %v285_v15, %v283_v6 }
  0xd5   : > { %v204_v19 = vsel %vm203_vm5, %v198_v5, %v200_v16  ;;  %v205_v20 = vsel %vm203_vm5, %v200_v16, %v198_v5  ;;  %v262_v21 = vsel %vm206_vm6, %v255_v12, 0.0  ;;  %v264_v22 = vsel %vm206_vm6, %v256_v13, 0.0 }
  0xd6   : > { %v265_v23 = vsel %vm206_vm6, %v257_v14, 0.0  ;;  %v291_v24 = vcombine.low %v287_v17, %v288_v18  ;;  %v270_v26 = vrot.slane %v262_v21, 1  ;;  %v273_v27 = vrot.slane %v264_v22, 7 }
  0xd7   : > { %v211_v28 = vcombine.low %v205_v20, %v204_v19  ;;  %v276_v29 = vrot.slane %v265_v23, 6  ;;  %v322_v45 = vpop.permute.xlu1 %321 }
  0xd8   : > { %v292_v30 = vrot.slane %v291_v24, 6  ;;  %v293_v31 = vrot.slane %v291_v24, 7  ;;  %v294_v32 = vrot.slane %v291_v24, 1  ;;  %v271_v33 = vsel %vm228_vm1, %v263_v25, %v270_v26  ;;  %v320_v46 = vpop.permute.xlu0 %319 }
  0xd9   : > { %v212_v34 = vrot.slane %v211_v28, 1  ;;  %v213_v35 = vrot.slane %v211_v28, 2  ;;  %v214_v36 = vrot.slane %v211_v28, 3  ;;  %v272_v37 = vsel %vm230_vm2, %v263_v25, %v271_v33 }
  0xda   : > { %v299_v38 = vsel %vm206_vm6, %v292_v30, 0.0  ;;  %v300_v39 = vsel %vm206_vm6, %v293_v31, 0.0  ;;  %v302_v40 = vsel %vm206_vm6, %v294_v32, 0.0  ;;  %v274_v41 = vsel %vm233_vm3, %v273_v27, %v272_v37 }
  0xdb   : > { %v301_v42 = vsel %vm206_vm6, %v291_v24, 0.0  ;;  %v307_v43 = vrot.slane %v299_v38, 2  ;;  %v308_v44 = vrot.slane %v300_v39, 1  ;;  %v275_v47 = vsel %vm235_vm7, %v273_v27, %v274_v41 }
  0xdc   : > { %v313_v48 = vrot.slane %v302_v40, 7  ;;  %v220_v49 = vsel %vm206_vm6, %v212_v34, 0.0  ;;  %v221_v50 = vsel %vm206_vm6, %v213_v35, 0.0  ;;  %v219_v52 = vsel %vm206_vm6, %v211_v28, 0.0 }
  0xdd   : > { %v309_v51 = vsel %vm228_vm1, %v308_v44, %v307_v43  ;;  %v222_v53 = vsel %vm206_vm6, %v214_v36, 0.0  ;;  %v227_v54 = vrot.slane %v220_v49, 7  ;;  %v232_v56 = vrot.slane %v221_v50, 6 }
  0xde   : > { %v310_v55 = vsel %vm230_vm2, %v308_v44, %v309_v51  ;;  %v277_v57 = vsel %vm238_vm8, %v276_v29, %v275_v47  ;;  %v324_v58 = vsel %vm323_vm9, %v320_v46, %v322_v45  ;;  %v325_v62 = vsel %vm323_vm9, %v322_v45, %v320_v46 }
  0xdf   : > { %v311_v59 = vsel %vm233_vm3, %v301_v42, %v310_v55  ;;  %v229_v60 = vsel %vm228_vm1, %v227_v54, %v219_v52  ;;  %v278_v61 = vsel %vm240_vm10, %v276_v29, %v277_v57  ;;  %v328_v1 = vcombine.low %v324_v58, %v325_v62 }
  0xe0   : > { %v312_v63 = vsel %vm235_vm7, %v301_v42, %v311_v59  ;;  %v231_v0 = vsel %vm230_vm2, %v227_v54, %v229_v60  ;;  %481 = vst [vmem:[%s904_s4 + $0x10] sm:$0xff] %v278_v61  ;;  %v237_v5 = vrot.slane %v222_v53, 5 }
  0xe1   : > { %v314_v2 = vsel %vm238_vm8, %v313_v48, %v312_v63  ;;  %v234_v4 = vsel %vm233_vm3, %v232_v56, %v231_v0  ;;  %v329_v3 = vrot.slane %v328_v1, 5  ;;  %v330_v9 = vrot.slane %v328_v1, 6 }
  0xe2   : > { %v236_v6 = vsel %vm235_vm7, %v232_v56, %v234_v4  ;;  %v315_v8 = vsel %vm240_vm10, %v313_v48, %v314_v2  ;;  %v331_v11 = vrot.slane %v328_v1, 7  ;;  %v339_v22 = vsel %vm206_vm6, %v328_v1, 0.0 }
  0xe3   : > { %v239_v10 = vsel %vm238_vm8, %v237_v5, %v236_v6  ;;  %482 = vst [vmem:[%s904_s4 + $0x18] sm:$0xff] %v315_v8  ;;  %v336_v13 = vsel %vm206_vm6, %v329_v3, 0.0  ;;  %v337_v14 = vsel %vm206_vm6, %v330_v9, 0.0 }
  0xe4   : > { %v241_v12 = vsel %vm240_vm10, %v237_v5, %v239_v10  ;;  %v338_v15 = vsel %vm206_vm6, %v331_v11, 0.0  ;;  %v344_v16 = vrot.slane %v336_v13, 3  ;;  %v345_v17 = vrot.slane %v337_v14, 2 }
  0xe5   : > { %480 = vst [vmem:[%s904_s4 + $0x8] sm:$0xff] %v241_v12  ;;  %v348_v19 = vrot.slane %v338_v15, 1 }
  0xe6   : > { %v346_v18 = vsel %vm228_vm1, %v345_v17, %v344_v16 }
  0xe7   : > { %v347_v20 = vsel %vm230_vm2, %v345_v17, %v346_v18 }
  0xe8   : > { %v349_v21 = vsel %vm233_vm3, %v348_v19, %v347_v20 }
  0xe9   : > { %v350_v23 = vsel %vm235_vm7, %v348_v19, %v349_v21 }
  0xea   : > { %v351_v24 = vsel %vm238_vm8, %v339_v22, %v350_v23 }
  0xeb   : > { %v352_v25 = vsel %vm240_vm10, %v339_v22, %v351_v24 }
  0xec   : > { %483 = vst [vmem:[%s904_s4 + $0x20] sm:$0xff] %v352_v25 }
  0xed   : > { %641 = shalt.err (!%p638_p5)
}
  0xee   : > { %s642_s7 = scalar_lea.hbm %s982_s24, 640  ;;  %s646_s3 = scalar_lea.hbm %s1038_s2, 1280 }
  0xef   : > { %p643_p10 = scmp.ne.s32.totalorder %s982_s24, %s642_s7  ;;  %p647_p7 = scmp.lt.u32.totalorder %s982_s24, %s1038_s2 }
  0xf0   : > { %p648_p3 = scmp.lt.u32.totalorder %s646_s3, %s642_s7  ;;  %p650_p11 = scmp.lt.u32.totalorder %s642_s7, %s982_s24 }
  0xf1   : > { %p644_p4 = pnand %p643_p10, %p841_p13 }
  0xf2   : > { %p649_p2 = por %p648_p3, %p647_p7 }
  0xf3   : > { %p645_p1 = pneg %p644_p4 }
  0xf4   : > { %p651_p6 = por %p650_p11, %p649_p2 }
  0xf6   : > { %p652_p8 = pnand %p651_p6, %p645_p1 }
  0xf8   : > { %655 = shalt.err (!%p652_p8)
}
  0xf9   : > { %s723_s19 = smov 128   ;;  %s724_s26 = smov 8  }
  0xfa   : > { %496 = dma.vmem_to_hbm [thread:$0]  (%p841_p13), %s984_s15, 640, %s982_s24, %s357_s12, %s723_s19, %s723_s19, %s724_s26  }
  0xfb PF: > { %s387_s17 = sand.u32 1, %s694_s9   ;;  %p1057_p9 = scmp.ne.s32.totalorder %s1046_s20, 0 }
  0xfc   : > { %p1058_p12 = scmp.ge.s32.totalorder %s714_s14, 2  ;;  %s388_s16 = scalar_lea.sflag [#allocation4], %s387_s17 }
  0xfe   : > { %p507_p0 = pnand %p1058_p12, %p1057_p9 }
 0x100   : > { %689 = dma.done.wait (!%p507_p0), %s388_s16, 640  }
 0x101   : > { %691 = vsyncadd (!%p507_p0), %s388_s16, 4294966656  ;;  %s19_s14 = sadd.s32 1, %s714_s14   ;;  %s1059_s9 = smov %s698_s10 }
 0x102   : > { %p16_p5 = scmp.ge.s32.totalorder %s19_s14, 4   ;;  %s1060_s10 = smov %s702_s11 }
 0x103   : > { %s1061_s11 = smov %s849_s28  ;;  %s1062_s12 = smov %s710_s13 }
 0x104   : > { %s1063_s13 = smov %s1065_s25  ;;  %18 = sbr.rel (!%p16_p5) target bundleno = 7 (0x7), region = 81 }
 0x10b   :  { %393 = vsyncpa [#allocation3], 1 }
 0x10c   :  { %395 = vsyncpa [#allocation3 + $0x1], 1 }
 0x10d   :  { %396 = vsyncpa [#allocation6], 1 }
 0x10e   :  { %397 = vsyncpa [#allocation4], 1 }
 0x10f   :  { %399 = vsyncpa [#allocation4 + $0x1], 1 }

</bundles_post_ra>
